<compile_context>
chip_gen: v6e
topology: v6e:2x2x1
jax: 0.10.0
libtpu: 0.0.40
codegen_flags: <defaults>
</compile_context>

<pallas_src>
import jax
import jax.numpy as jnp
from jax.experimental import pallas as pl
from jax.experimental.pallas import tpu as pltpu

IN_F = 10
HID_F = 10
OUT_F = 5


def toy_mlp_kernel(x_ref, w1_ref, b1_ref, w2_ref, b2_ref, o_ref):
    # x_ref:  [IN_F,  TB]   (batch on lanes)
    # w1_ref: [HID_F, IN_F], b1_ref: [HID_F, 1]
    # w2_ref: [OUT_F, HID_F], b2_ref: [OUT_F, 1]
    # o_ref:  [OUT_F, TB]
    x = x_ref[...]
    w1 = w1_ref[...]
    w2 = w2_ref[...]

    # net1: h = W1 @ x + b1 as K=10 broadcast multiply-adds on the VPU
    # (column of W broadcast across lanes x row of x broadcast across sublanes).
    h = w1[:, 0:1] * x[0:1, :]
    for i in range(1, IN_F):
        h = h + w1[:, i:i + 1] * x[i:i + 1, :]
    h = jnp.maximum(h + b1_ref[...], 0.0)          # ReLU

    # net2: y = W2 @ h + b2 (K=10 FMA chain again).
    y = w2[:, 0:1] * h[0:1, :]
    for i in range(1, HID_F):
        y = y + w2[:, i:i + 1] * h[i:i + 1, :]

    o_ref[...] = (y + b2_ref[...]).astype(o_ref.dtype)


def _round_up(n, m):
    return ((n + m - 1) // m) * m


def toy_model_forward(x, w1, b1, w2, b2, *, block_b=512):
    """x: [B, 10] f32; w1: [10, 10] (out, in); b1: [10]; w2: [5, 10] (out, in); b2: [5].

    Returns [B, 5] f32, matching PyTorch's net2(relu(net1(x))).
    """
    B = x.shape[0]
    # Lane-dense batch tile: multiple of 128, modest size -> fits comfortably in
    # the scoped VMEM of v5e/v6e/v7x with depth-2 double buffering.
    TB = min(block_b, _round_up(B, 128))
    Bp = _round_up(B, TB)

    # Layout plumbing in the wrapper: transpose batch onto lanes and pad it to
    # a multiple of the tile (padded columns are sliced off at the end).
    xt = jnp.pad(x.astype(jnp.float32).T, ((0, 0), (0, Bp - B)))
    b1c = b1.reshape(HID_F, 1).astype(jnp.float32)
    b2c = b2.reshape(OUT_F, 1).astype(jnp.float32)

    yt = pl.pallas_call(
        toy_mlp_kernel,
        out_shape=jax.ShapeDtypeStruct((OUT_F, Bp), jnp.float32),
        grid=(Bp // TB,),
        in_specs=[
            pl.BlockSpec((IN_F, TB), lambda i: (0, i)),        # x^T tile per step
            pl.BlockSpec((HID_F, IN_F), lambda i: (0, 0)),     # W1 resident
            pl.BlockSpec((HID_F, 1), lambda i: (0, 0)),        # b1 resident
            pl.BlockSpec((OUT_F, HID_F), lambda i: (0, 0)),    # W2 resident
            pl.BlockSpec((OUT_F, 1), lambda i: (0, 0)),        # b2 resident
        ],
        out_specs=pl.BlockSpec((OUT_F, TB), lambda i: (0, i)),
        compiler_params=pltpu.CompilerParams(
            dimension_semantics=("parallel",)),                # megacore on v7x
    )(xt, w1.astype(jnp.float32), b1c, w2.astype(jnp.float32), b2c)

    return yt[:, :B].T


if __name__ == "__main__":
    key = jax.random.PRNGKey(0)
    kx, k1, kb1, k2, kb2 = jax.random.split(key, 5)

    B = 8  # small batch
    x = jax.random.normal(kx, (B, IN_F), dtype=jnp.float32)

    # PyTorch-style init: U(-1/sqrt(fan_in), 1/sqrt(fan_in)); weights in
    # PyTorch layout [out_features, in_features].
    bound1 = 1.0 / jnp.sqrt(IN_F)
    w1 = jax.random.uniform(k1, (HID_F, IN_F), jnp.float32, -bound1, bound1)
    b1 = jax.random.uniform(kb1, (HID_F,), jnp.float32, -bound1, bound1)
    bound2 = 1.0 / jnp.sqrt(HID_F)
    w2 = jax.random.uniform(k2, (OUT_F, HID_F), jnp.float32, -bound2, bound2)
    b2 = jax.random.uniform(kb2, (OUT_F,), jnp.float32, -bound2, bound2)

    out = jax.block_until_ready(toy_model_forward(x, w1, b1, w2, b2))

    # Pure-JAX reference (PyTorch semantics: y = x @ W.T + b).
    ref = jnp.maximum(x @ w1.T + b1, 0.0) @ w2.T + b2
    assert out.shape == (B, OUT_F)
    assert jnp.allclose(out, ref, atol=1e-5, rtol=1e-5), "mismatch vs reference"

    print("KERNEL_OK")
</pallas_src>

<mosaic_0001>
module attributes {stable_mosaic.version = 11 : i64} {
  func.func @toy_mlp_kernel(%arg0: i32, %arg1: memref<10x128xf32, #tpu.memory_space<vmem>>, %arg2: memref<10x10xf32, #tpu.memory_space<vmem>>, %arg3: memref<10x1xf32, #tpu.memory_space<vmem>>, %arg4: memref<5x10xf32, #tpu.memory_space<vmem>>, %arg5: memref<5x1xf32, #tpu.memory_space<vmem>>, %arg6: memref<5x128xf32, #tpu.memory_space<vmem>>) attributes {dimension_semantics = [#tpu.dimension_semantics<parallel>], iteration_bounds = array<i64: 1>, scalar_prefetch = 0 : i64, scratch_operands = 0 : i64, tpu.core_type = #tpu.core_type<tc>, window_params = [{transform_indices = @transform_0, window_bounds = array<i64: 10, 128>}, {pipeline_mode = #tpu.pipeline_mode<synchronous>, transform_indices = @transform_1, window_bounds = array<i64: 10, 10>}, {pipeline_mode = #tpu.pipeline_mode<synchronous>, transform_indices = @transform_2, window_bounds = array<i64: 10, 1>}, {pipeline_mode = #tpu.pipeline_mode<synchronous>, transform_indices = @transform_3, window_bounds = array<i64: 5, 10>}, {pipeline_mode = #tpu.pipeline_mode<synchronous>, transform_indices = @transform_4, window_bounds = array<i64: 5, 1>}, {transform_indices = @transform_5, window_bounds = array<i64: 5, 128>}]} {
    %c0 = arith.constant 0 : index
    %c0_0 = arith.constant 0 : index
    %0 = vector.load %arg1[%c0, %c0_0] : memref<10x128xf32, #tpu.memory_space<vmem>>, vector<10x128xf32>
    %c0_1 = arith.constant 0 : index
    %c0_2 = arith.constant 0 : index
    %1 = vector.load %arg2[%c0_1, %c0_2] : memref<10x10xf32, #tpu.memory_space<vmem>>, vector<10x10xf32>
    %c0_3 = arith.constant 0 : index
    %c0_4 = arith.constant 0 : index
    %2 = vector.load %arg4[%c0_3, %c0_4] : memref<5x10xf32, #tpu.memory_space<vmem>>, vector<5x10xf32>
    %3 = vector.extract_strided_slice %1 {offsets = [0, 0], sizes = [10, 1], strides = [1, 1]} : vector<10x10xf32> to vector<10x1xf32>
    %4 = vector.extract_strided_slice %0 {offsets = [0, 0], sizes = [1, 128], strides = [1, 1]} : vector<10x128xf32> to vector<1x128xf32>
    %5 = vector.broadcast %3 : vector<10x1xf32> to vector<10x128xf32>
    %6 = vector.broadcast %4 : vector<1x128xf32> to vector<10x128xf32>
    %7 = arith.mulf %5, %6 : vector<10x128xf32>
    %8 = vector.extract_strided_slice %1 {offsets = [0, 1], sizes = [10, 1], strides = [1, 1]} : vector<10x10xf32> to vector<10x1xf32>
    %9 = vector.extract_strided_slice %0 {offsets = [1, 0], sizes = [1, 128], strides = [1, 1]} : vector<10x128xf32> to vector<1x128xf32>
    %10 = vector.broadcast %8 : vector<10x1xf32> to vector<10x128xf32>
    %11 = vector.broadcast %9 : vector<1x128xf32> to vector<10x128xf32>
    %12 = arith.mulf %10, %11 : vector<10x128xf32>
    %13 = arith.addf %7, %12 : vector<10x128xf32>
    %14 = vector.extract_strided_slice %1 {offsets = [0, 2], sizes = [10, 1], strides = [1, 1]} : vector<10x10xf32> to vector<10x1xf32>
    %15 = vector.extract_strided_slice %0 {offsets = [2, 0], sizes = [1, 128], strides = [1, 1]} : vector<10x128xf32> to vector<1x128xf32>
    %16 = vector.broadcast %14 : vector<10x1xf32> to vector<10x128xf32>
    %17 = vector.broadcast %15 : vector<1x128xf32> to vector<10x128xf32>
    %18 = arith.mulf %16, %17 : vector<10x128xf32>
    %19 = arith.addf %13, %18 : vector<10x128xf32>
    %20 = vector.extract_strided_slice %1 {offsets = [0, 3], sizes = [10, 1], strides = [1, 1]} : vector<10x10xf32> to vector<10x1xf32>
    %21 = vector.extract_strided_slice %0 {offsets = [3, 0], sizes = [1, 128], strides = [1, 1]} : vector<10x128xf32> to vector<1x128xf32>
    %22 = vector.broadcast %20 : vector<10x1xf32> to vector<10x128xf32>
    %23 = vector.broadcast %21 : vector<1x128xf32> to vector<10x128xf32>
    %24 = arith.mulf %22, %23 : vector<10x128xf32>
    %25 = arith.addf %19, %24 : vector<10x128xf32>
    %26 = vector.extract_strided_slice %1 {offsets = [0, 4], sizes = [10, 1], strides = [1, 1]} : vector<10x10xf32> to vector<10x1xf32>
    %27 = vector.extract_strided_slice %0 {offsets = [4, 0], sizes = [1, 128], strides = [1, 1]} : vector<10x128xf32> to vector<1x128xf32>
    %28 = vector.broadcast %26 : vector<10x1xf32> to vector<10x128xf32>
    %29 = vector.broadcast %27 : vector<1x128xf32> to vector<10x128xf32>
    %30 = arith.mulf %28, %29 : vector<10x128xf32>
    %31 = arith.addf %25, %30 : vector<10x128xf32>
    %32 = vector.extract_strided_slice %1 {offsets = [0, 5], sizes = [10, 1], strides = [1, 1]} : vector<10x10xf32> to vector<10x1xf32>
    %33 = vector.extract_strided_slice %0 {offsets = [5, 0], sizes = [1, 128], strides = [1, 1]} : vector<10x128xf32> to vector<1x128xf32>
    %34 = vector.broadcast %32 : vector<10x1xf32> to vector<10x128xf32>
    %35 = vector.broadcast %33 : vector<1x128xf32> to vector<10x128xf32>
    %36 = arith.mulf %34, %35 : vector<10x128xf32>
    %37 = arith.addf %31, %36 : vector<10x128xf32>
    %38 = vector.extract_strided_slice %1 {offsets = [0, 6], sizes = [10, 1], strides = [1, 1]} : vector<10x10xf32> to vector<10x1xf32>
    %39 = vector.extract_strided_slice %0 {offsets = [6, 0], sizes = [1, 128], strides = [1, 1]} : vector<10x128xf32> to vector<1x128xf32>
    %40 = vector.broadcast %38 : vector<10x1xf32> to vector<10x128xf32>
    %41 = vector.broadcast %39 : vector<1x128xf32> to vector<10x128xf32>
    %42 = arith.mulf %40, %41 : vector<10x128xf32>
    %43 = arith.addf %37, %42 : vector<10x128xf32>
    %44 = vector.extract_strided_slice %1 {offsets = [0, 7], sizes = [10, 1], strides = [1, 1]} : vector<10x10xf32> to vector<10x1xf32>
    %45 = vector.extract_strided_slice %0 {offsets = [7, 0], sizes = [1, 128], strides = [1, 1]} : vector<10x128xf32> to vector<1x128xf32>
    %46 = vector.broadcast %44 : vector<10x1xf32> to vector<10x128xf32>
    %47 = vector.broadcast %45 : vector<1x128xf32> to vector<10x128xf32>
    %48 = arith.mulf %46, %47 : vector<10x128xf32>
    %49 = arith.addf %43, %48 : vector<10x128xf32>
    %50 = vector.extract_strided_slice %1 {offsets = [0, 8], sizes = [10, 1], strides = [1, 1]} : vector<10x10xf32> to vector<10x1xf32>
    %51 = vector.extract_strided_slice %0 {offsets = [8, 0], sizes = [1, 128], strides = [1, 1]} : vector<10x128xf32> to vector<1x128xf32>
    %52 = vector.broadcast %50 : vector<10x1xf32> to vector<10x128xf32>
    %53 = vector.broadcast %51 : vector<1x128xf32> to vector<10x128xf32>
    %54 = arith.mulf %52, %53 : vector<10x128xf32>
    %55 = arith.addf %49, %54 : vector<10x128xf32>
    %56 = vector.extract_strided_slice %1 {offsets = [0, 9], sizes = [10, 1], strides = [1, 1]} : vector<10x10xf32> to vector<10x1xf32>
    %57 = vector.extract_strided_slice %0 {offsets = [9, 0], sizes = [1, 128], strides = [1, 1]} : vector<10x128xf32> to vector<1x128xf32>
    %58 = vector.broadcast %56 : vector<10x1xf32> to vector<10x128xf32>
    %59 = vector.broadcast %57 : vector<1x128xf32> to vector<10x128xf32>
    %60 = arith.mulf %58, %59 : vector<10x128xf32>
    %61 = arith.addf %55, %60 : vector<10x128xf32>
    %c0_5 = arith.constant 0 : index
    %c0_6 = arith.constant 0 : index
    %62 = vector.load %arg3[%c0_5, %c0_6] : memref<10x1xf32, #tpu.memory_space<vmem>>, vector<10x1xf32>
    %63 = vector.broadcast %62 : vector<10x1xf32> to vector<10x128xf32>
    %64 = arith.addf %61, %63 : vector<10x128xf32>
    %cst = arith.constant 0.000000e+00 : f32
    %65 = vector.broadcast %cst : f32 to vector<10x128xf32>
    %66 = arith.maximumf %64, %65 : vector<10x128xf32>
    %67 = vector.extract_strided_slice %2 {offsets = [0, 0], sizes = [5, 1], strides = [1, 1]} : vector<5x10xf32> to vector<5x1xf32>
    %68 = vector.extract_strided_slice %66 {offsets = [0, 0], sizes = [1, 128], strides = [1, 1]} : vector<10x128xf32> to vector<1x128xf32>
    %69 = vector.broadcast %67 : vector<5x1xf32> to vector<5x128xf32>
    %70 = vector.broadcast %68 : vector<1x128xf32> to vector<5x128xf32>
    %71 = arith.mulf %69, %70 : vector<5x128xf32>
    %72 = vector.extract_strided_slice %2 {offsets = [0, 1], sizes = [5, 1], strides = [1, 1]} : vector<5x10xf32> to vector<5x1xf32>
    %73 = vector.extract_strided_slice %66 {offsets = [1, 0], sizes = [1, 128], strides = [1, 1]} : vector<10x128xf32> to vector<1x128xf32>
    %74 = vector.broadcast %72 : vector<5x1xf32> to vector<5x128xf32>
    %75 = vector.broadcast %73 : vector<1x128xf32> to vector<5x128xf32>
    %76 = arith.mulf %74, %75 : vector<5x128xf32>
    %77 = arith.addf %71, %76 : vector<5x128xf32>
    %78 = vector.extract_strided_slice %2 {offsets = [0, 2], sizes = [5, 1], strides = [1, 1]} : vector<5x10xf32> to vector<5x1xf32>
    %79 = vector.extract_strided_slice %66 {offsets = [2, 0], sizes = [1, 128], strides = [1, 1]} : vector<10x128xf32> to vector<1x128xf32>
    %80 = vector.broadcast %78 : vector<5x1xf32> to vector<5x128xf32>
    %81 = vector.broadcast %79 : vector<1x128xf32> to vector<5x128xf32>
    %82 = arith.mulf %80, %81 : vector<5x128xf32>
    %83 = arith.addf %77, %82 : vector<5x128xf32>
    %84 = vector.extract_strided_slice %2 {offsets = [0, 3], sizes = [5, 1], strides = [1, 1]} : vector<5x10xf32> to vector<5x1xf32>
    %85 = vector.extract_strided_slice %66 {offsets = [3, 0], sizes = [1, 128], strides = [1, 1]} : vector<10x128xf32> to vector<1x128xf32>
    %86 = vector.broadcast %84 : vector<5x1xf32> to vector<5x128xf32>
    %87 = vector.broadcast %85 : vector<1x128xf32> to vector<5x128xf32>
    %88 = arith.mulf %86, %87 : vector<5x128xf32>
    %89 = arith.addf %83, %88 : vector<5x128xf32>
    %90 = vector.extract_strided_slice %2 {offsets = [0, 4], sizes = [5, 1], strides = [1, 1]} : vector<5x10xf32> to vector<5x1xf32>
    %91 = vector.extract_strided_slice %66 {offsets = [4, 0], sizes = [1, 128], strides = [1, 1]} : vector<10x128xf32> to vector<1x128xf32>
    %92 = vector.broadcast %90 : vector<5x1xf32> to vector<5x128xf32>
    %93 = vector.broadcast %91 : vector<1x128xf32> to vector<5x128xf32>
    %94 = arith.mulf %92, %93 : vector<5x128xf32>
    %95 = arith.addf %89, %94 : vector<5x128xf32>
    %96 = vector.extract_strided_slice %2 {offsets = [0, 5], sizes = [5, 1], strides = [1, 1]} : vector<5x10xf32> to vector<5x1xf32>
    %97 = vector.extract_strided_slice %66 {offsets = [5, 0], sizes = [1, 128], strides = [1, 1]} : vector<10x128xf32> to vector<1x128xf32>
    %98 = vector.broadcast %96 : vector<5x1xf32> to vector<5x128xf32>
    %99 = vector.broadcast %97 : vector<1x128xf32> to vector<5x128xf32>
    %100 = arith.mulf %98, %99 : vector<5x128xf32>
    %101 = arith.addf %95, %100 : vector<5x128xf32>
    %102 = vector.extract_strided_slice %2 {offsets = [0, 6], sizes = [5, 1], strides = [1, 1]} : vector<5x10xf32> to vector<5x1xf32>
    %103 = vector.extract_strided_slice %66 {offsets = [6, 0], sizes = [1, 128], strides = [1, 1]} : vector<10x128xf32> to vector<1x128xf32>
    %104 = vector.broadcast %102 : vector<5x1xf32> to vector<5x128xf32>
    %105 = vector.broadcast %103 : vector<1x128xf32> to vector<5x128xf32>
    %106 = arith.mulf %104, %105 : vector<5x128xf32>
    %107 = arith.addf %101, %106 : vector<5x128xf32>
    %108 = vector.extract_strided_slice %2 {offsets = [0, 7], sizes = [5, 1], strides = [1, 1]} : vector<5x10xf32> to vector<5x1xf32>
    %109 = vector.extract_strided_slice %66 {offsets = [7, 0], sizes = [1, 128], strides = [1, 1]} : vector<10x128xf32> to vector<1x128xf32>
    %110 = vector.broadcast %108 : vector<5x1xf32> to vector<5x128xf32>
    %111 = vector.broadcast %109 : vector<1x128xf32> to vector<5x128xf32>
    %112 = arith.mulf %110, %111 : vector<5x128xf32>
    %113 = arith.addf %107, %112 : vector<5x128xf32>
    %114 = vector.extract_strided_slice %2 {offsets = [0, 8], sizes = [5, 1], strides = [1, 1]} : vector<5x10xf32> to vector<5x1xf32>
    %115 = vector.extract_strided_slice %66 {offsets = [8, 0], sizes = [1, 128], strides = [1, 1]} : vector<10x128xf32> to vector<1x128xf32>
    %116 = vector.broadcast %114 : vector<5x1xf32> to vector<5x128xf32>
    %117 = vector.broadcast %115 : vector<1x128xf32> to vector<5x128xf32>
    %118 = arith.mulf %116, %117 : vector<5x128xf32>
    %119 = arith.addf %113, %118 : vector<5x128xf32>
    %120 = vector.extract_strided_slice %2 {offsets = [0, 9], sizes = [5, 1], strides = [1, 1]} : vector<5x10xf32> to vector<5x1xf32>
    %121 = vector.extract_strided_slice %66 {offsets = [9, 0], sizes = [1, 128], strides = [1, 1]} : vector<10x128xf32> to vector<1x128xf32>
    %122 = vector.broadcast %120 : vector<5x1xf32> to vector<5x128xf32>
    %123 = vector.broadcast %121 : vector<1x128xf32> to vector<5x128xf32>
    %124 = arith.mulf %122, %123 : vector<5x128xf32>
    %125 = arith.addf %119, %124 : vector<5x128xf32>
    %c0_7 = arith.constant 0 : index
    %c0_8 = arith.constant 0 : index
    %126 = vector.load %arg5[%c0_7, %c0_8] : memref<5x1xf32, #tpu.memory_space<vmem>>, vector<5x1xf32>
    %127 = vector.broadcast %126 : vector<5x1xf32> to vector<5x128xf32>
    %128 = arith.addf %125, %127 : vector<5x128xf32>
    %c0_9 = arith.constant 0 : index
    %c0_10 = arith.constant 0 : index
    %129 = vector.load %arg6[%c0_9, %c0_10] : memref<5x128xf32, #tpu.memory_space<vmem>>, vector<5x128xf32>
    tpu.vector_store %arg6[%c0_9, %c0_10], %128 {strides = array<i32>} : memref<5x128xf32, #tpu.memory_space<vmem>>, vector<5x128xf32>,
    return
  }
  func.func @transform_0(%arg0: i32) -> (i32, i32) {
    %c0_i32 = arith.constant 0 : i32
    %c0_i32_0 = arith.constant 0 : i32
    return %c0_i32, %arg0 : i32, i32
  }
  func.func @transform_1(%arg0: i32) -> (i32, i32) {
    %c0_i32 = arith.constant 0 : i32
    %c0_i32_0 = arith.constant 0 : i32
    %c0_i32_1 = arith.constant 0 : i32
    return %c0_i32, %c0_i32_0 : i32, i32
  }
  func.func @transform_2(%arg0: i32) -> (i32, i32) {
    %c0_i32 = arith.constant 0 : i32
    %c0_i32_0 = arith.constant 0 : i32
    %c0_i32_1 = arith.constant 0 : i32
    return %c0_i32, %c0_i32_0 : i32, i32
  }
  func.func @transform_3(%arg0: i32) -> (i32, i32) {
    %c0_i32 = arith.constant 0 : i32
    %c0_i32_0 = arith.constant 0 : i32
    %c0_i32_1 = arith.constant 0 : i32
    return %c0_i32, %c0_i32_0 : i32, i32
  }
  func.func @transform_4(%arg0: i32) -> (i32, i32) {
    %c0_i32 = arith.constant 0 : i32
    %c0_i32_0 = arith.constant 0 : i32
    %c0_i32_1 = arith.constant 0 : i32
    return %c0_i32, %c0_i32_0 : i32, i32
  }
  func.func @transform_5(%arg0: i32) -> (i32, i32) {
    %c0_i32 = arith.constant 0 : i32
    %c0_i32_0 = arith.constant 0 : i32
    return %c0_i32, %arg0 : i32, i32
  }
}

</mosaic_0001>

<bundles_post_ra>
// kernel: tpu_custom_call.1
= control target key start
LH: loop header
LB: loop body
LE: loop exit
PB: predicated region body
PF: predicated region fallthrough
CT: control target
= control target key end

     0   :  { %10 = vsyncpa [#allocation3], 0  ;;  %s552_s0 = inlined_call_operand.vmem [shape: f32[10,128], index: 0, kind: input, shape index: {}]   ;;  %s553_s1 = inlined_call_operand.hbm [shape: f32[10,10], index: 1, kind: input, shape index: {}]   ;;  %s554_s2 = inlined_call_operand.vmem [shape: f32[10,1], index: 2, kind: input, shape index: {}]   ;;  %s555_s3 = inlined_call_operand.vmem [shape: f32[5,10], index: 3, kind: input, shape index: {}]   ;;  %s556_s4 = inlined_call_operand.vmem [shape: f32[5,1], index: 4, kind: input, shape index: {}]   ;;  %s557_s5 = inlined_call_operand.hbm [shape: f32[5,128], index: 5, kind: output, shape index: {}]  }
   0x1   :  { %11 = vsyncpa [#allocation4], 0  ;;  %s429_s18 = smov [#allocation2]  }
   0x2   :  { %s19_s19 = sshll.u32 %s429_s18, 4  ;;  %s20_s19 = int_to_ptr.vmem [resolvable:$true] %s19_s19 }
   0x3   :  { %s393_s20 = scalar_lea.vmem %s20_s19, 256  ;;  %p398_p1 = scmp.lt.s32.totalorder %s20_s19, %s20_s19 }
   0x4   :  { %p394_p0 = scmp.ne.s32.totalorder %s20_s19, %s393_s20  ;;  %p399_p2 = scmp.lt.s32.totalorder %s393_s20, %s393_s20 }
   0x6   :  { %p400_p3 = por %p399_p2, %p398_p1 }
   0x8   :  { %p401_p4 = pnand %p400_p3, %p394_p0 }
   0xa   :  { %404 = shalt.err (!%p401_p4)
}
   0xb   :  { %s430_s21 = smov 128   ;;  %s431_s22 = smov 8  }
   0xc   :  { %25 = dma.hbm_to_vmem [thread:$0]  %s553_s1, 256, %s20_s19, [#allocation3], %s430_s21, %s430_s21, %s431_s22  }
   0xd   :  { %425 = dma.done.wait [#allocation3], 256  }
   0xe   :  { %426 = vsyncadd [#allocation3], 4294967040  ;;  %v432_v0 = vmov 1   ;;  %v433_v1 = vmov 0   ;;  %v37_v2 = vld [vmem:[#allocation2] sm:$0xff]  ;;  %v434_v4 = vmov 2   ;;  %v50_v20 = vlaneseq }
   0xf   :  { %354 = vset.pattern.permute.xlu1 %v432_v0  ;;  %353 = vset.pattern.permute.xlu0 %v433_v1  ;;  %v38_v3 = vld [vmem:[#allocation2 + $0x8] sm:$0x3]  ;;  %v435_v5 = vmov 4   ;;  %v436_v6 = vmov 3   ;;  %v437_v7 = vmov 7   ;;  %v438_v8 = vmov 5  }
  0x10   :  { %57 = vperm.xlu1 %354, %v37_v2   ;;  %42 = vperm.xlu0 %353, %v37_v2   ;;  %v439_v9 = vmov 6   ;;  %v440_v10 = vmov 8   ;;  %v39_v11 = vld [vmem:[%s555_s3] sm:$0x1f]  ;;  %v441_v12 = vmov 9   ;;  %v496_v21 = vshrl.u32 %v50_v20, 7 }
  0x11   :  { %v200_v13 = vld [vmem:[%s554_s2] sm:$0xff]  ;;  %v201_v14 = vld [vmem:[%s554_s2 + $0x8] sm:$0x3] }
  0x12   :  { %v316_v15 = vld [vmem:[%s556_s4] sm:$0x1f]  ;;  %v499_v24 = vsub.s32 1, %v496_v21  ;;  %v502_v25 = vsub.s32 0, %v496_v21  ;;  %v82_v28 = vsub.s32 2, %v496_v21  ;;  %v98_v32 = vsub.s32 3, %v496_v21 }
  0x13   :  { %v35_v26 = vld [vmem:[%s552_s0] sm:$0xff]  ;;  %v114_v39 = vsub.s32 4, %v496_v21  ;;  %v130_v45 = vsub.s32 5, %v496_v21  ;;  %v146_v48 = vsub.s32 6, %v496_v21  ;;  %v162_v53 = vsub.s32 7, %v496_v21 }
  0x14   :  { %61 = vperm.xlu1 %354, %v38_v3   ;;  %355 = vset.pattern.permute.xlu0 %v434_v4  ;;  %v67_v30 = vrot.slane %v35_v26, %v499_v24  ;;  %v53_v31 = vrot.slane %v35_v26, %v502_v25  ;;  %v83_v33 = vrot.slane %v35_v26, %v82_v28  ;;  %v36_v61 = vld [vmem:[%s552_s0 + $0x8] sm:$0x3]  ;;  %s442_s0 = smov [#allocation5]  }
  0x15   :  { %73 = vperm.xlu0 %355, %v37_v2   ;;  %v99_v38 = vrot.slane %v35_v26, %v98_v32  ;;  %v115_v44 = vrot.slane %v35_v26, %v114_v39  ;;  %v131_v51 = vrot.slane %v35_v26, %v130_v45  ;;  %v147_v54 = vrot.slane %v35_v26, %v146_v48  ;;  %s330_s8 = sshll.u32 %s442_s0, 4  ;;  %s331_s8 = int_to_ptr.vmem [resolvable:$true] %s330_s8 }
  0x16   :  { %v163_v59 = vrot.slane %v35_v26, %v162_v53  ;;  %s405_s9 = scalar_lea.vmem %s331_s8, 128  ;;  %p410_p6 = scmp.lt.s32.totalorder %s331_s8, %s331_s8 }
  0x17   :  { %p406_p5 = scmp.ne.s32.totalorder %s331_s8, %s405_s9  ;;  %p411_p7 = scmp.lt.s32.totalorder %s405_s9, %s405_s9 }
  0x18   :  { %356 = vset.pattern.permute.xlu1 %v434_v4 }
  0x19   :  { %77 = vperm.xlu1 %356, %v38_v3   ;;  %358 = vset.pattern.permute.xlu0 %v435_v5  ;;  %p412_p8 = por %p411_p7, %p410_p6 }
  0x1a   :  { %105 = vperm.xlu0 %358, %v37_v2  }
  0x1b   :  { %p413_p9 = pnand %p412_p8, %p406_p5 }
  0x1d   :  { %357 = vset.pattern.permute.xlu1 %v436_v6 }
  0x1e   :  { %89 = vperm.xlu1 %357, %v37_v2   ;;  %361 = vset.pattern.permute.xlu0 %v437_v7 }
  0x1f   :  { %153 = vperm.xlu0 %361, %v37_v2  }
  0x22   :  { %359 = vset.pattern.permute.xlu1 %v438_v8 }
  0x23   :  { %121 = vperm.xlu1 %359, %v37_v2   ;;  %364 = vset.pattern.permute.xlu0 %v436_v6 }
  0x24   :  { %93 = vperm.xlu0 %364, %v38_v3  }
  0x27   :  { %360 = vset.pattern.permute.xlu1 %v439_v9 }
  0x28   :  { %137 = vperm.xlu1 %360, %v37_v2   ;;  %367 = vset.pattern.permute.xlu0 %v438_v8 }
  0x29   :  { %125 = vperm.xlu0 %367, %v38_v3  }
  0x2c   :  { %362 = vset.pattern.permute.xlu1 %v440_v10 }
  0x2d   :  { %169 = vperm.xlu1 %362, %v37_v2   ;;  %368 = vset.pattern.permute.xlu0 %v433_v1 }
  0x2e   :  { %47 = vperm.xlu0 %368, %v38_v3  }
  0x31   :  { %363 = vset.pattern.permute.xlu1 %v441_v12 }
  0x32   :  { %185 = vperm.xlu1 %363, %v37_v2   ;;  %218 = vperm.xlu0 %368, %v39_v11   ;;  %v179_v2 = vrot.slane %v36_v61, %v502_v25 }
  0x36   :  { %365 = vset.pattern.permute.xlu1 %v435_v5  ;;  %373 = vset.pattern.permute.xlu0 %v434_v4  ;;  %v195_v4 = vrot.slane %v36_v61, %v499_v24 }
  0x37   :  { %109 = vperm.xlu1 %365, %v38_v3   ;;  %237 = vperm.xlu0 %373, %v39_v11  }
  0x3b   :  { %366 = vset.pattern.permute.xlu1 %v433_v1  ;;  %376 = vset.pattern.permute.xlu0 %v435_v5 }
  0x3c   :  { %204 = vperm.xlu1 %366, %v200_v13   ;;  %257 = vperm.xlu0 %376, %v39_v11  }
  0x40   :  { %369 = vset.pattern.permute.xlu1 %v439_v9  ;;  %379 = vset.pattern.permute.xlu0 %v439_v9 }
  0x41   :  { %141 = vperm.xlu1 %369, %v38_v3   ;;  %277 = vperm.xlu0 %379, %v39_v11  }
  0x45   :  { %370 = vset.pattern.permute.xlu1 %v437_v7  ;;  %382 = vset.pattern.permute.xlu0 %v441_v12 }
  0x46   :  { %157 = vperm.xlu1 %370, %v38_v3   ;;  %307 = vperm.xlu0 %382, %v39_v11  }
  0x4a   :  { %371 = vset.pattern.permute.xlu1 %v432_v0  ;;  %384 = vset.pattern.permute.xlu0 %v433_v1 }
  0x4b   :  { %227 = vperm.xlu1 %371, %v39_v11  }
  0x4f   :  { %372 = vset.pattern.permute.xlu1 %v440_v10 }
  0x50   :  { %173 = vperm.xlu1 %372, %v38_v3  }
  0x54   :  { %374 = vset.pattern.permute.xlu1 %v441_v12 }
  0x55   :  { %189 = vperm.xlu1 %374, %v38_v3  }
  0x59   :  { %375 = vset.pattern.permute.xlu1 %v436_v6 }
  0x5a   :  { %247 = vperm.xlu1 %375, %v39_v11  }
  0x5e   :  { %377 = vset.pattern.permute.xlu1 %v433_v1 }
  0x5f   :  { %209 = vperm.xlu1 %377, %v201_v14  }
  0x63   :  { %378 = vset.pattern.permute.xlu1 %v438_v8 }
  0x64   :  { %267 = vperm.xlu1 %378, %v39_v11  }
  0x68   :  { %380 = vset.pattern.permute.xlu1 %v437_v7 }
  0x69   :  { %287 = vperm.xlu1 %380, %v39_v11  }
  0x6d   :  { %381 = vset.pattern.permute.xlu1 %v440_v10 }
  0x6e   :  { %297 = vperm.xlu1 %381, %v39_v11  }
  0x72   :  { %383 = vset.pattern.permute.xlu1 %v433_v1 }
  0x73   :  { %319 = vperm.xlu1 %383, %v316_v15  }
  0x8b   :  { %v58_v16 = vpop.permute.xlu1 %57  ;;  %v43_v23 = vpop.permute.xlu0 %42 }
  0x8c   :  { %v68_v36 = vmul.f32 %v67_v30, %v58_v16  ;;  %v54_v37 = vmul.f32 %v53_v31, %v43_v23 }
  0x8e   :  { %v70_v42 = vadd.f32 %v68_v36, %v54_v37 }
  0x8f   :  { %v62_v17 = vpop.permute.xlu1 %61 }
  0x90   :  { %v74_v29 = vpop.permute.xlu0 %73  ;;  %v69_v12 = vmul.f32 %v67_v30, %v62_v17 }
  0x91   :  { %v84_v40 = vmul.f32 %v83_v33, %v74_v29 }
  0x93   :  { %v86_v47 = vadd.f32 %v84_v40, %v70_v42 }
  0x94   :  { %v494_v18 = vpop.permute.xlu1 %77 }
  0x95   :  { %v106_v35 = vpop.permute.xlu0 %105 }
  0x96   :  { %v116_v50 = vmul.f32 %v115_v44, %v106_v35 }
  0x99   :  { %v90_v19 = vpop.permute.xlu1 %89 }
  0x9a   :  { %v100_v43 = vmul.f32 %v99_v38, %v90_v19  ;;  %v154_v46 = vpop.permute.xlu0 %153  ;;  %v85_v19 = vmul.f32 %v83_v33, %v494_v18 }
  0x9b   :  { %v164_v0 = vmul.f32 %v163_v59, %v154_v46 }
  0x9c   :  { %v102_v49 = vadd.f32 %v100_v43, %v86_v47 }
  0x9e   :  { %v122_v22 = vpop.permute.xlu1 %121  ;;  %v118_v56 = vadd.f32 %v116_v50, %v102_v49 }
  0x9f   :  { %v94_v55 = vpop.permute.xlu0 %93  ;;  %v132_v57 = vmul.f32 %v131_v51, %v122_v22 }
  0xa0   :  { %v101_v22 = vmul.f32 %v99_v38, %v94_v55 }
  0xa1   :  { %v134_v62 = vadd.f32 %v132_v57, %v118_v56 }
  0xa3   :  { %v138_v27 = vpop.permute.xlu1 %137 }
  0xa4   :  { %v148_v60 = vmul.f32 %v147_v54, %v138_v27  ;;  %v126_v63 = vpop.permute.xlu0 %125 }
  0xa6   :  { %v150_v1 = vadd.f32 %v148_v60, %v134_v62 }
  0xa8   :  { %v170_v34 = vpop.permute.xlu1 %169  ;;  %v166_v5 = vadd.f32 %v164_v0, %v150_v1 }
  0xa9   :  { %v180_v6 = vmul.f32 %v179_v2, %v170_v34  ;;  %v48_v7 = vpop.permute.xlu0 %47 }
  0xaa   :  { %v55_v11 = vmul.f32 %v53_v31, %v48_v7  ;;  %v133_v31 = vmul.f32 %v131_v51, %v126_v63 }
  0xab   :  { %v182_v10 = vadd.f32 %v180_v6, %v166_v5 }
  0xac   :  { %v71_v15 = vadd.f32 %v69_v12, %v55_v11 }
  0xad   :  { %v186_v41 = vpop.permute.xlu1 %185  ;;  %v219_v29 = vpop.permute.xlu0 %218 }
  0xae   :  { %v196_v9 = vmul.f32 %v195_v4, %v186_v41  ;;  %v87_v23 = vadd.f32 %v85_v19, %v71_v15 }
  0xb0   :  { %v198_v13 = vadd.f32 %v196_v9, %v182_v10  ;;  %v103_v35 = vadd.f32 %v101_v22, %v87_v23 }
  0xb2   :  { %v110_v52 = vpop.permute.xlu1 %109  ;;  %v238_v33 = vpop.permute.xlu0 %237 }
  0xb3   :  { %v117_v27 = vmul.f32 %v115_v44, %v110_v52 }
  0xb5   :  { %v119_v17 = vadd.f32 %v117_v27, %v103_v35 }
  0xb7   :  { %v205_v58 = vpop.permute.xlu1 %204  ;;  %v135_v42 = vadd.f32 %v133_v31, %v119_v17 }
  0xb8   :  { %v212_v16 = vadd.f32 %v205_v58, %v198_v13 }
  0xba   :  { %v214_v26 = vmax.f32 %v212_v16, 0.0 }
  0xbc   :  { %v142_v3 = vpop.permute.xlu1 %141  ;;  %v224_v34 = vrot.slane %v214_v26, %v502_v25  ;;  %v233_v36 = vrot.slane %v214_v26, %v499_v24  ;;  %v243_v18 = vrot.slane %v214_v26, %v82_v28  ;;  %v253_v46 = vrot.slane %v214_v26, %v98_v32  ;;  %v258_v28 = vpop.permute.xlu0 %257 }
  0xbd   :  { %v149_v40 = vmul.f32 %v147_v54, %v142_v3  ;;  %v263_v51 = vrot.slane %v214_v26, %v114_v39  ;;  %v273_v62 = vrot.slane %v214_v26, %v130_v45  ;;  %v283_v63 = vrot.slane %v214_v26, %v146_v48 }
  0xbe   :  { %v225_v41 = vmul.f32 %v224_v34, %v219_v29  ;;  %v244_v50 = vmul.f32 %v243_v18, %v238_v33  ;;  %v293_v7 = vrot.slane %v214_v26, %v162_v53 }
  0xbf   :  { %v151_v47 = vadd.f32 %v149_v40, %v135_v42  ;;  %v264_v61 = vmul.f32 %v263_v51, %v258_v28 }
  0xc0   :  { %v278_v39 = vpop.permute.xlu0 %277 }
  0xc1   :  { %v158_v8 = vpop.permute.xlu1 %157 }
  0xc2   :  { %v165_v43 = vmul.f32 %v163_v59, %v158_v8 }
  0xc4   :  { %v167_v54 = vadd.f32 %v165_v43, %v151_v47  ;;  %v308_v11 = vpop.permute.xlu0 %307 }
  0xc6   :  { %v228_v14 = vpop.permute.xlu1 %227 }
  0xc7   :  { %v234_v30 = vmul.f32 %v233_v36, %v228_v14 }
  0xc9   :  { %v235_v44 = vadd.f32 %v234_v30, %v225_v41 }
  0xcb   :  { %v174_v20 = vpop.permute.xlu1 %173  ;;  %v245_v56 = vadd.f32 %v244_v50, %v235_v44 }
  0xcc   :  { %v181_v49 = vmul.f32 %v179_v2, %v174_v20 }
  0xce   :  { %v183_v58 = vadd.f32 %v181_v49, %v167_v54 }
  0xd0   :  { %v190_v37 = vpop.permute.xlu1 %189 }
  0xd1   :  { %v197_v55 = vmul.f32 %v195_v4, %v190_v37  ;;  %v284_v4 = vmul.f32 %v283_v63, %v278_v39 }
  0xd3   :  { %v199_v59 = vadd.f32 %v197_v55, %v183_v58 }
  0xd5   :  { %v248_v38 = vpop.permute.xlu1 %247 }
  0xd6   :  { %v254_v52 = vmul.f32 %v253_v46, %v248_v38 }
  0xd8   :  { %v255_v60 = vadd.f32 %v254_v52, %v245_v56 }
  0xda   :  { %v210_v57 = vpop.permute.xlu1 %209  ;;  %v265_v1 = vadd.f32 %v264_v61, %v255_v60 }
  0xdb   :  { %v213_v0 = vadd.f32 %v210_v57, %v199_v59 }
  0xdd   :  { %v215_v5 = vmax.f32 %v213_v0, 0.0 }
  0xdf   :  { %v268_v32 = vpop.permute.xlu1 %267  ;;  %v313_v10 = vrot.slane %v215_v5, %v499_v24  ;;  %v303_v45 = vrot.slane %v215_v5, %v502_v25 }
  0xe0   :  { %v274_v2 = vmul.f32 %v273_v62, %v268_v32 }
  0xe1   :  { %v314_v14 = vmul.f32 %v313_v10, %v308_v11 }
  0xe2   :  { %v275_v3 = vadd.f32 %v274_v2, %v265_v1 }
  0xe4   :  { %v288_v6 = vpop.permute.xlu1 %287  ;;  %v285_v8 = vadd.f32 %v284_v4, %v275_v3 }
  0xe5   :  { %v294_v9 = vmul.f32 %v293_v7, %v288_v6 }
  0xe7   :  { %v295_v48 = vadd.f32 %v294_v9, %v285_v8 }
  0xe9   :  { %v298_v12 = vpop.permute.xlu1 %297 }
  0xea   :  { %v304_v13 = vmul.f32 %v303_v45, %v298_v12 }
  0xec   :  { %v305_v15 = vadd.f32 %v304_v13, %v295_v48 }
  0xee   :  { %v320_v16 = vpop.permute.xlu1 %319  ;;  %v315_v19 = vadd.f32 %v314_v14, %v305_v15 }
  0xf0   :  { %v322_v20 = vadd.f32 %v320_v16, %v315_v19 }
  0xf2   :  { %323 = vst [vmem:[#allocation5] sm:$0x1f] %v322_v20 }
  0xf3   :  { %416 = shalt.err (!%p413_p9)
}
  0xf4   :  { %333 = dma.vmem_to_hbm [thread:$0]  %s331_s8, 128, %s557_s5, [#allocation4]  }
  0xf5   :  { %427 = dma.done.wait [#allocation4], 128  }
  0xf6   :  { %428 = vsyncadd [#allocation4], 4294967168 }
  0xf7   :  { %337 = vsyncpa [#allocation3], 1 }
  0xf8   :  { %338 = vsyncpa [#allocation4], 1 }

</bundles_post_ra>
